<compile_context>
chip_gen: v7x
topology: tpu7x:2x2x1
jax: 0.10.0
libtpu: 0.0.40
codegen_flags: <defaults>
</compile_context>

<pallas_src>
import functools

import numpy as np
import jax
import jax.numpy as jnp
from jax.experimental import pallas as pl
from jax.experimental.pallas import tpu as pltpu

# ---- RIDELoss hyperparameters (as in __init__; deterministic, in-script) ----
MAX_M = 0.5
S = 30.0
BASE_LOSS_FACTOR = 1.0
ADDITIONAL_DIVERSITY_FACTOR = -0.2
REWEIGHT_FACTOR = 0.05
BASE_DIVERSITY_TEMPERATURE = 1.0
# reweight=True, reweight_epoch=0 and we simulate _hook_before_epoch(epoch=1), i.e.
# epoch > reweight_epoch, so per_cls_weights_base / per_cls_weights_diversity are enabled.


def _ride_constants(cls_num_list):
    """Host-side (numpy) replica of the __init__ per-class constant math."""
    cls_num_list = np.asarray(cls_num_list, dtype=np.float64)
    num_classes = len(cls_num_list)

    m_list = 1.0 / np.sqrt(np.sqrt(cls_num_list))
    m_list = m_list * (MAX_M / np.max(m_list))

    beta = 0.9999
    effective_num = 1.0 - np.power(beta, cls_num_list)
    w_base = (1.0 - beta) / effective_num
    w_base = w_base / np.sum(w_base) * num_classes

    prior = cls_num_list / np.sum(cls_num_list)
    w_div = num_classes * prior * REWEIGHT_FACTOR + 1.0 - REWEIGHT_FACTOR
    w_div = w_div / np.max(w_div)
    assert np.all(w_div > 0), "reweight factor is too large: out of bounds"

    temps = BASE_DIVERSITY_TEMPERATURE * w_div
    t_mean = float(temps.mean())          # .item() in PyTorch -> compile-time constant here
    return (m_list.astype(np.float32), w_base.astype(np.float32),
            temps.astype(np.float32), t_mean)


def _ride_loss_kernel(target_ref, m_s_ref, w_base_ref, inv_t_ref,
                      teacher_ref, expert_ref, loss_ref, *, n_batch, div_scale):
    experts = expert_ref[...].astype(jnp.float32)        # (E, B, C)  all expert logits
    teacher = teacher_ref[...].astype(jnp.float32)       # (B, C)     output_logits
    tgt = target_ref[...]                                 # (B, 1)     int32
    _, b, c = experts.shape

    cls_ids = jax.lax.broadcasted_iota(jnp.int32, (b, c), 1)
    onehot = cls_ids == tgt                                # (B, C) bool

    # ---------- expert-invariant (hoisted) quantities ----------
    margin = jnp.where(onehot, m_s_ref[...], 0.0)                          # (B, C)  m_list*s at tgt
    w_t = jnp.sum(jnp.where(onehot, w_base_ref[...], 0.0),
                  axis=-1, keepdims=True)                                  # (B, 1)  CE weight per row
    w_sum = jnp.sum(w_t, axis=0, keepdims=True)                            # (1, 1)

    inv_t = inv_t_ref[...]                                                 # (1, C) = 1 / T
    zt = teacher * inv_t
    zt_max = jnp.max(zt, axis=-1, keepdims=True)
    zt_sh = zt - zt_max
    et = jnp.exp(zt_sh)                                                    # (B, C)
    et_sum = jnp.sum(et, axis=-1, keepdims=True)                           # (B, 1)
    log_p = zt_sh - jnp.log(et_sum)                                        # (B, C) teacher log-probs
    s_p = jnp.sum(et * log_p, axis=-1, keepdims=True)                      # (B, 1) unnormalized entropy term
    inv_et_sum = pl.reciprocal(et_sum, approx=False)                       # (B, 1)

    # ---------- LDAM margin + class-weighted cross entropy, all experts at once ----------
    final = experts - margin[None]                                         # (E, B, C)
    row_max = jnp.max(final, axis=-1, keepdims=True)
    shifted = final - row_max
    lse = jnp.log(jnp.sum(jnp.exp(shifted), axis=-1, keepdims=True))       # (E, B, 1)
    tgt_logit = jnp.sum(jnp.where(onehot[None], shifted, 0.0),
                        axis=-1, keepdims=True)                            # (E, B, 1)
    ce_terms = -w_t[None] * (tgt_logit - lse)                              # (E, B, 1)
    ce_num = jnp.sum(jnp.sum(ce_terms, axis=0), axis=0, keepdims=True)     # (1, 1)
    ce_total = ce_num * pl.reciprocal(w_sum, approx=False)                 # (1, 1) = sum_e weighted-mean CE

    # ---------- diversity KL( softmax(teacher/T) || softmax(expert/T) ), batchmean ----------
    zs = experts * inv_t[None]                                             # (E, B, C)
    zs_max = jnp.max(zs, axis=-1, keepdims=True)
    zs_sh = zs - zs_max
    log_q = zs_sh - jnp.log(jnp.sum(jnp.exp(zs_sh), axis=-1, keepdims=True))
    cross = jnp.sum(et[None] * log_q, axis=-1, keepdims=True)              # (E, B, 1)
    kl_rows = (s_p[None] - cross) * inv_et_sum[None]                       # (E, B, 1)
    kl_total = jnp.sum(jnp.sum(kl_rows, axis=0), axis=0, keepdims=True) \
               * jnp.float32(1.0 / n_batch)                                # (1, 1)

    # single store of the scalar result
    loss_ref[...] = (jnp.float32(BASE_LOSS_FACTOR) * ce_total
                     + jnp.float32(div_scale) * kl_total)


def ride_loss(output_logits, target, expert_logits, m_list, w_base, temps, t_mean):
    """output_logits: (B, C), target: (B,) int, expert_logits: (E, B, C)."""
    E, B, C = expert_logits.shape
    m_s = (m_list * jnp.float32(S)).reshape(1, C).astype(jnp.float32)
    w_base2 = w_base.reshape(1, C).astype(jnp.float32)
    inv_t = (1.0 / temps).reshape(1, C).astype(jnp.float32)
    tgt2 = target.reshape(B, 1).astype(jnp.int32)
    div_scale = ADDITIONAL_DIVERSITY_FACTOR * (t_mean ** 2)

    kernel = functools.partial(_ride_loss_kernel, n_batch=B, div_scale=div_scale)

    cost = pl.CostEstimate(
        flops=int(E * B * C * 40),
        transcendentals=int((E + 1) * B * C * 2),
        bytes_accessed=int(4 * (E * B * C + B * C + 3 * C + B + 1)),
    )

    # TODO(synk): realistic RIDE sizes (C~100-1000, B>=256) would add a "parallel"
    # batch-tile grid axis (partial ce/kl reductions) so v7x's two TensorCores split
    # the batch; at these tiny shapes a single-invocation kernel is optimal.
    loss = pl.pallas_call(
        kernel,
        out_shape=jax.ShapeDtypeStruct((1, 1), jnp.float32),
        cost_estimate=cost,
    )(tgt2, m_s, w_base2, inv_t, output_logits, expert_logits)

    return loss[0, 0]


def _reference(output_logits, target, expert_logits, m_list, w_base, temps, t_mean):
    """Pure-JAX mirror of RIDELoss.forward (extra_info path)."""
    E, B, C = expert_logits.shape
    T = temps[None, :]
    onehot = jax.nn.one_hot(target, C, dtype=jnp.float32)
    loss = jnp.float32(0.0)
    for e in range(E):
        logits = expert_logits[e]
        batch_m = m_list[target][:, None]
        x_m = logits - batch_m * S
        final = jnp.where(onehot > 0, x_m, logits)
        logp = jax.nn.log_softmax(final, axis=-1)
        nll = -jnp.take_along_axis(logp, target[:, None], axis=-1)[:, 0]
        w_t = w_base[target]
        ce = jnp.sum(w_t * nll) / jnp.sum(w_t)
        loss = loss + BASE_LOSS_FACTOR * ce
        out_dist = jax.nn.log_softmax(logits / T, axis=-1)
        mean_dist = jax.nn.softmax(output_logits / T, axis=-1)
        kl = jnp.sum(mean_dist * (jnp.log(mean_dist) - out_dist)) / B
        loss = loss + ADDITIONAL_DIVERSITY_FACTOR * (t_mean ** 2) * kl
    return loss


if __name__ == "__main__":
    # Small shapes consistent with the module: B=16 samples, C=32 classes, E=3 experts.
    B, C, E = 16, 32, 3

    # Deterministic long-tailed class-count list (static, host-side).
    cls_num_list = (np.exp(-np.linspace(0.0, 3.0, C)) * 1000.0).astype(np.int64) + 1
    m_list_np, w_base_np, temps_np, t_mean = _ride_constants(cls_num_list)

    key = jax.random.PRNGKey(0)
    k1, k2, k3 = jax.random.split(key, 3)
    output_logits = jax.random.normal(k1, (B, C), dtype=jnp.float32)
    expert_logits = jax.random.normal(k2, (E, B, C), dtype=jnp.float32)
    target = jax.random.randint(k3, (B,), 0, C, dtype=jnp.int32)

    m_list = jnp.asarray(m_list_np)
    w_base = jnp.asarray(w_base_np)
    temps = jnp.asarray(temps_np)

    # TODO(synk): the extra_info=None fallback (plain F.cross_entropy) and the epoch hook are
    # configuration-time Python; only the main RIDE forward path is implemented as a kernel.
    loss = ride_loss(output_logits, target, expert_logits, m_list, w_base, temps, t_mean)
    jax.block_until_ready(loss)

    ref = _reference(output_logits, target, expert_logits, m_list, w_base, temps, t_mean)
    assert jnp.isfinite(loss)
    assert jnp.allclose(loss, ref, atol=1e-4, rtol=1e-4), (float(loss), float(ref))

    print("KERNEL_OK")
</pallas_src>

<mosaic_0001>
module attributes {stable_mosaic.version = 11 : i64} {
  func.func @_ride_loss_kernel(%arg0: memref<16x1xi32, #tpu.memory_space<vmem>>, %arg1: memref<1x32xf32, #tpu.memory_space<vmem>>, %arg2: memref<1x32xf32, #tpu.memory_space<vmem>>, %arg3: memref<1x32xf32, #tpu.memory_space<vmem>>, %arg4: memref<16x32xf32, #tpu.memory_space<vmem>>, %arg5: memref<3x16x32xf32, #tpu.memory_space<vmem>>, %arg6: memref<1x1xf32, #tpu.memory_space<vmem>>) attributes {dimension_semantics = [], scalar_prefetch = 0 : i64, scratch_operands = 0 : i64, tpu.core_type = #tpu.core_type<tc>} {
    %c0 = arith.constant 0 : index
    %c0_0 = arith.constant 0 : index
    %c0_1 = arith.constant 0 : index
    %0 = vector.load %arg5[%c0, %c0_0, %c0_1] : memref<3x16x32xf32, #tpu.memory_space<vmem>>, vector<3x16x32xf32>
    %c0_2 = arith.constant 0 : index
    %c0_3 = arith.constant 0 : index
    %1 = vector.load %arg4[%c0_2, %c0_3] : memref<16x32xf32, #tpu.memory_space<vmem>>, vector<16x32xf32>
    %c0_4 = arith.constant 0 : index
    %c0_5 = arith.constant 0 : index
    %2 = vector.load %arg0[%c0_4, %c0_5] : memref<16x1xi32, #tpu.memory_space<vmem>>, vector<16x1xi32>
    %3 = tpu.iota {dimensions = array<i32: 1>} : vector<16x32xi32>
    %4 = vector.broadcast %2 : vector<16x1xi32> to vector<16x32xi32>
    %5 = arith.cmpi eq, %3, %4 : vector<16x32xi32>
    %c0_6 = arith.constant 0 : index
    %c0_7 = arith.constant 0 : index
    %6 = vector.load %arg1[%c0_6, %c0_7] : memref<1x32xf32, #tpu.memory_space<vmem>>, vector<1x32xf32>
    %cst = arith.constant 0.000000e+00 : f32
    %7 = vector.shape_cast %6 : vector<1x32xf32> to vector<1x32xf32>
    %8 = vector.broadcast %7 : vector<1x32xf32> to vector<16x32xf32>
    %9 = vector.broadcast %cst : f32 to vector<16x32xf32>
    %10 = arith.select %5, %8, %9 : vector<16x32xi1>, vector<16x32xf32>
    %c0_8 = arith.constant 0 : index
    %c0_9 = arith.constant 0 : index
    %11 = vector.load %arg2[%c0_8, %c0_9] : memref<1x32xf32, #tpu.memory_space<vmem>>, vector<1x32xf32>
    %cst_10 = arith.constant 0.000000e+00 : f32
    %12 = vector.shape_cast %11 : vector<1x32xf32> to vector<1x32xf32>
    %13 = vector.broadcast %12 : vector<1x32xf32> to vector<16x32xf32>
    %14 = vector.broadcast %cst_10 : f32 to vector<16x32xf32>
    %15 = arith.select %5, %13, %14 : vector<16x32xi1>, vector<16x32xf32>
    %cst_11 = arith.constant dense<0.000000e+00> : vector<16xf32>
    %16 = vector.multi_reduction <add>, %15, %cst_11 [1] : vector<16x32xf32> to vector<16xf32>
    %17 = vector.shape_cast %16 : vector<16xf32> to vector<16x1xf32>
    %cst_12 = arith.constant dense<0.000000e+00> : vector<1xf32>
    %18 = vector.multi_reduction <add>, %17, %cst_12 [0] : vector<16x1xf32> to vector<1xf32>
    %19 = vector.shape_cast %18 : vector<1xf32> to vector<1x1xf32>
    %c0_13 = arith.constant 0 : index
    %c0_14 = arith.constant 0 : index
    %20 = vector.load %arg3[%c0_13, %c0_14] : memref<1x32xf32, #tpu.memory_space<vmem>>, vector<1x32xf32>
    %21 = vector.broadcast %20 : vector<1x32xf32> to vector<16x32xf32>
    %22 = arith.mulf %1, %21 : vector<16x32xf32>
    %cst_15 = arith.constant dense<0xFF800000> : vector<16xf32>
    %23 = vector.multi_reduction <maximumf>, %22, %cst_15 [1] : vector<16x32xf32> to vector<16xf32>
    %24 = vector.shape_cast %23 : vector<16xf32> to vector<16x1xf32>
    %25 = vector.broadcast %24 : vector<16x1xf32> to vector<16x32xf32>
    %26 = arith.subf %22, %25 : vector<16x32xf32>
    %27 = math.exp %26 : vector<16x32xf32>
    %cst_16 = arith.constant dense<0.000000e+00> : vector<16xf32>
    %28 = vector.multi_reduction <add>, %27, %cst_16 [1] : vector<16x32xf32> to vector<16xf32>
    %29 = vector.shape_cast %28 : vector<16xf32> to vector<16x1xf32>
    %30 = math.log %29 : vector<16x1xf32>
    %31 = vector.broadcast %30 : vector<16x1xf32> to vector<16x32xf32>
    %32 = arith.subf %26, %31 : vector<16x32xf32>
    %33 = arith.mulf %27, %32 : vector<16x32xf32>
    %cst_17 = arith.constant dense<0.000000e+00> : vector<16xf32>
    %34 = vector.multi_reduction <add>, %33, %cst_17 [1] : vector<16x32xf32> to vector<16xf32>
    %35 = vector.shape_cast %34 : vector<16xf32> to vector<16x1xf32>
    %36 = tpu.reciprocal %29 : vector<16x1xf32> -> vector<16x1xf32>
    %37 = vector.shape_cast %10 : vector<16x32xf32> to vector<1x16x32xf32>
    %38 = vector.broadcast %37 : vector<1x16x32xf32> to vector<3x16x32xf32>
    %39 = arith.subf %0, %38 : vector<3x16x32xf32>
    %cst_18 = arith.constant dense<0xFF800000> : vector<3x16xf32>
    %40 = vector.multi_reduction <maximumf>, %39, %cst_18 [2] : vector<3x16x32xf32> to vector<3x16xf32>
    %41 = vector.shape_cast %40 : vector<3x16xf32> to vector<3x16x1xf32>
    %42 = vector.broadcast %41 : vector<3x16x1xf32> to vector<3x16x32xf32>
    %43 = arith.subf %39, %42 : vector<3x16x32xf32>
    %44 = math.exp %43 : vector<3x16x32xf32>
    %cst_19 = arith.constant dense<0.000000e+00> : vector<3x16xf32>
    %45 = vector.multi_reduction <add>, %44, %cst_19 [2] : vector<3x16x32xf32> to vector<3x16xf32>
    %46 = vector.shape_cast %45 : vector<3x16xf32> to vector<3x16x1xf32>
    %47 = math.log %46 : vector<3x16x1xf32>
    %48 = vector.shape_cast %5 : vector<16x32xi1> to vector<1x16x32xi1>
    %cst_20 = arith.constant 0.000000e+00 : f32
    %49 = vector.shape_cast %48 : vector<1x16x32xi1> to vector<1x16x32xi1>
    %50 = vector.broadcast %49 : vector<1x16x32xi1> to vector<3x16x32xi1>
    %51 = vector.broadcast %cst_20 : f32 to vector<3x16x32xf32>
    %52 = arith.select %50, %43, %51 : vector<3x16x32xi1>, vector<3x16x32xf32>
    %cst_21 = arith.constant dense<0.000000e+00> : vector<3x16xf32>
    %53 = vector.multi_reduction <add>, %52, %cst_21 [2] : vector<3x16x32xf32> to vector<3x16xf32>
    %54 = vector.shape_cast %53 : vector<3x16xf32> to vector<3x16x1xf32>
    %55 = vector.shape_cast %17 : vector<16x1xf32> to vector<1x16x1xf32>
    %cst_22 = arith.constant 0.000000e+00 : f32
    %56 = vector.broadcast %cst_22 : f32 to vector<1x16x1xf32>
    %57 = arith.subf %56, %55 : vector<1x16x1xf32>
    %58 = arith.subf %54, %47 : vector<3x16x1xf32>
    %59 = vector.broadcast %57 : vector<1x16x1xf32> to vector<3x16x1xf32>
    %60 = arith.mulf %59, %58 : vector<3x16x1xf32>
    %cst_23 = arith.constant dense<0.000000e+00> : vector<16x1xf32>
    %61 = vector.multi_reduction <add>, %60, %cst_23 [0] : vector<3x16x1xf32> to vector<16x1xf32>
    %cst_24 = arith.constant dense<0.000000e+00> : vector<1xf32>
    %62 = vector.multi_reduction <add>, %61, %cst_24 [0] : vector<16x1xf32> to vector<1xf32>
    %63 = vector.shape_cast %62 : vector<1xf32> to vector<1x1xf32>
    %64 = tpu.reciprocal %19 : vector<1x1xf32> -> vector<1x1xf32>
    %65 = arith.mulf %63, %64 : vector<1x1xf32>
    %66 = vector.shape_cast %20 : vector<1x32xf32> to vector<1x1x32xf32>
    %67 = vector.broadcast %66 : vector<1x1x32xf32> to vector<3x16x32xf32>
    %68 = arith.mulf %0, %67 : vector<3x16x32xf32>
    %cst_25 = arith.constant dense<0xFF800000> : vector<3x16xf32>
    %69 = vector.multi_reduction <maximumf>, %68, %cst_25 [2] : vector<3x16x32xf32> to vector<3x16xf32>
    %70 = vector.shape_cast %69 : vector<3x16xf32> to vector<3x16x1xf32>
    %71 = vector.broadcast %70 : vector<3x16x1xf32> to vector<3x16x32xf32>
    %72 = arith.subf %68, %71 : vector<3x16x32xf32>
    %73 = math.exp %72 : vector<3x16x32xf32>
    %cst_26 = arith.constant dense<0.000000e+00> : vector<3x16xf32>
    %74 = vector.multi_reduction <add>, %73, %cst_26 [2] : vector<3x16x32xf32> to vector<3x16xf32>
    %75 = vector.shape_cast %74 : vector<3x16xf32> to vector<3x16x1xf32>
    %76 = math.log %75 : vector<3x16x1xf32>
    %77 = vector.broadcast %76 : vector<3x16x1xf32> to vector<3x16x32xf32>
    %78 = arith.subf %72, %77 : vector<3x16x32xf32>
    %79 = vector.shape_cast %27 : vector<16x32xf32> to vector<1x16x32xf32>
    %80 = vector.broadcast %79 : vector<1x16x32xf32> to vector<3x16x32xf32>
    %81 = arith.mulf %80, %78 : vector<3x16x32xf32>
    %cst_27 = arith.constant dense<0.000000e+00> : vector<3x16xf32>
    %82 = vector.multi_reduction <add>, %81, %cst_27 [2] : vector<3x16x32xf32> to vector<3x16xf32>
    %83 = vector.shape_cast %82 : vector<3x16xf32> to vector<3x16x1xf32>
    %84 = vector.shape_cast %35 : vector<16x1xf32> to vector<1x16x1xf32>
    %85 = vector.broadcast %84 : vector<1x16x1xf32> to vector<3x16x1xf32>
    %86 = arith.subf %85, %83 : vector<3x16x1xf32>
    %87 = vector.shape_cast %36 : vector<16x1xf32> to vector<1x16x1xf32>
    %88 = vector.broadcast %87 : vector<1x16x1xf32> to vector<3x16x1xf32>
    %89 = arith.mulf %86, %88 : vector<3x16x1xf32>
    %cst_28 = arith.constant dense<0.000000e+00> : vector<16x1xf32>
    %90 = vector.multi_reduction <add>, %89, %cst_28 [0] : vector<3x16x1xf32> to vector<16x1xf32>
    %cst_29 = arith.constant dense<0.000000e+00> : vector<1xf32>
    %91 = vector.multi_reduction <add>, %90, %cst_29 [0] : vector<16x1xf32> to vector<1xf32>
    %92 = vector.shape_cast %91 : vector<1xf32> to vector<1x1xf32>
    %cst_30 = arith.constant 6.250000e-02 : f32
    %93 = vector.broadcast %cst_30 : f32 to vector<1x1xf32>
    %94 = arith.mulf %92, %93 : vector<1x1xf32>
    %cst_31 = arith.constant 1.000000e+00 : f32
    %95 = vector.broadcast %cst_31 : f32 to vector<1x1xf32>
    %96 = arith.mulf %95, %65 : vector<1x1xf32>
    %cst_32 = arith.constant -0.16395247 : f32
    %97 = vector.broadcast %cst_32 : f32 to vector<1x1xf32>
    %98 = arith.mulf %97, %94 : vector<1x1xf32>
    %99 = arith.addf %96, %98 : vector<1x1xf32>
    %c0_33 = arith.constant 0 : index
    %c0_34 = arith.constant 0 : index
    %100 = vector.load %arg6[%c0_33, %c0_34] : memref<1x1xf32, #tpu.memory_space<vmem>>, vector<1x1xf32>
    tpu.vector_store %arg6[%c0_33, %c0_34], %99 {strides = array<i32>} : memref<1x1xf32, #tpu.memory_space<vmem>>, vector<1x1xf32>,
    return
  }
}

</mosaic_0001>

<bundles_post_ra>
// kernel: tpu_custom_call.1
= control target key start
LH: loop header
LB: loop body
LE: loop exit
PB: predicated region body
PF: predicated region fallthrough
CT: control target
= control target key end

     0   :  { %11 = vsyncpa [#allocation3], 0  ;;  %s810_s0 = inlined_call_operand.vmem [shape: s32[16,1], index: 0, kind: input, shape index: {}]   ;;  %s811_s1 = inlined_call_operand.vmem [shape: f32[1,32], index: 1, kind: input, shape index: {}]   ;;  %s812_s2 = inlined_call_operand.vmem [shape: f32[1,32], index: 2, kind: input, shape index: {}]   ;;  %s813_s3 = inlined_call_operand.vmem [shape: f32[1,32], index: 3, kind: input, shape index: {}]   ;;  %s814_s4 = inlined_call_operand.vmem [shape: f32[16,32], index: 4, kind: input, shape index: {}]   ;;  %s815_s5 = inlined_call_operand.hbm [shape: f32[3,16,32], index: 5, kind: input, shape index: {}]   ;;  %s816_s6 = inlined_call_operand.hbm [shape: f32[1,1], index: 6, kind: output, shape index: {}]  }
   0x1   :  { %12 = vsyncpa [#allocation4], 0  ;;  %s525_s21 = smov [#allocation2]   ;;  %s477_s25 = scalar_lea.hbm %s815_s5, 768 }
   0x2   :  { %s28_s22 = sshll.u32 %s525_s21, 4  ;;  %p478_p0 = scmp.ne.s32.totalorder %s815_s5, %s477_s25  ;;  %s29_s22 = int_to_ptr.vmem [resolvable:$true] %s28_s22 }
   0x3   :  { %p481_p1 = scmp.lt.u32.totalorder %s477_s25, %s815_s5 }
   0x5   :  { %p483_p2 = pnand %p481_p1, %p478_p0 }
   0x7   :  { %486 = shalt.err (!%p483_p2)
}
   0x8   :  { %s487_s30 = scalar_lea.vmem %s29_s22, 768  ;;  %p492_p4 = scmp.lt.s32.totalorder %s29_s22, %s29_s22 }
   0x9   :  { %p488_p3 = scmp.ne.s32.totalorder %s29_s22, %s487_s30  ;;  %p493_p5 = scmp.lt.s32.totalorder %s487_s30, %s487_s30 }
   0xb   :  { %p494_p6 = por %p493_p5, %p492_p4 }
   0xd   :  { %p495_p7 = pnand %p494_p6, %p488_p3 }
   0xf   :  { %498 = shalt.err (!%p495_p7)
}
  0x10   :  { %s526_s7 = smov 128   ;;  %s527_s8 = smov 8  }
  0x11   :  { %34 = dma.hbm_to_vmem [thread:$0]  %s815_s5, 768, %s29_s22, [#allocation3], %s526_s7, %s526_s7, %s527_s8  }
  0x12   :  { %521 = dma.done.wait [#allocation3], 768  }
  0x13   :  { %522 = vsyncadd [#allocation3], 4294966528  ;;  %v528_v0 = vmov 0   ;;  %v44_v1 = vld [vmem:[%s814_s4] sm:$0xff]  ;;  %vm76_vm0 = vcmask 261120   ;;  %v583_v3 = vld [vmem:[#allocation2] sm:$0xff]  ;;  %v48_v37 = vlaneseq }
  0x14   :  { %414 = vset.pattern.permute.xlu1 %v528_v0  ;;  %413 = vset.pattern.permute.xlu0 %v528_v0  ;;  %v407_v2 = vld [vmem:[%s813_s3] ss:$0 sm:$0xff]  ;;  %v45_v6 = vld [vmem:[%s814_s4 + $0x8] sm:$0xff]  ;;  %v39_v7 = vld [vmem:[#allocation2 + $0x8] sm:$0xff]  ;;  %vm388_vm3 = vcmask 0  }
  0x15   :  { %v585_v4 = vmul.f32 %v407_v2, %v44_v1  ;;  %v260_v5 = vmul.f32 %v407_v2, %v583_v3  ;;  %v591_v8 = vmul.f32 %v407_v2, %v45_v6  ;;  %v593_v9 = vmul.f32 %v407_v2, %v39_v7  ;;  %v40_v10 = vld [vmem:[#allocation2 + $0x10] sm:$0xff]  ;;  %v595_v11 = vld [vmem:[#allocation2 + $0x18] sm:$0xff]  ;;  %v607_v18 = vld [vmem:[#allocation2 + $0x20] sm:$0xff] }
  0x16   :  { %v262_v16 = vmul.f32 %v407_v2, %v40_v10  ;;  %v605_v17 = vmul.f32 %v407_v2, %v595_v11  ;;  %v609_v19 = vld [vmem:[#allocation2 + $0x28] sm:$0xff]  ;;  %v264_v22 = vmul.f32 %v407_v2, %v607_v18  ;;  %v47_v26 = vld [vmem:[%s810_s0 + $0x8] sm:$0xff]  ;;  %v46_v27 = vld [vmem:[%s810_s0] sm:$0xff]  ;;  %v49_v42 = vand.u32 127, %v48_v37 }
  0x17   :  { %v99_v12 = vsel %vm76_vm0, %v585_v4, -inf  ;;  %v266_v13 = vsel %vm76_vm0, %v260_v5, -inf  ;;  %v102_v14 = vsel %vm76_vm0, %v591_v8, -inf  ;;  %v269_v15 = vsel %vm76_vm0, %v593_v9, -inf  ;;  %v405_v43 = vld [vmem:[%s811_s1] ss:$0 sm:$0xff] }
  0x18   :  { %100 = vmax.xlane.f32.xlu0 %v99_v12  ;;  %267 = vmax.xlane.f32.xlu1 %v266_v13  ;;  %v272_v20 = vsel %vm76_vm0, %v262_v16, -inf  ;;  %v275_v21 = vsel %vm76_vm0, %v605_v17, -inf  ;;  %v616_v23 = vmul.f32 %v407_v2, %v609_v19  ;;  %v278_v24 = vsel %vm76_vm0, %v264_v22, -inf }
  0x1a   :  { %v281_v25 = vsel %vm76_vm0, %v616_v23, -inf }
  0x1c   :  { %103 = vmax.xlane.f32.xlu0 %v102_v14  ;;  %270 = vmax.xlane.f32.xlu1 %v269_v15 }
  0x20   :  { %273 = vmax.xlane.f32.xlu0 %v272_v20  ;;  %276 = vmax.xlane.f32.xlu1 %v275_v21 }
  0x24   :  { %279 = vmax.xlane.f32.xlu0 %v278_v24  ;;  %282 = vmax.xlane.f32.xlu1 %v281_v25 }
  0x35   :  { %54 = vperm.xlu1 %414, %v47_v26  }
  0x3a   :  { %51 = vperm.xlu0 %413, %v46_v27  }
  0xa5   :  { %v101_v28 = vpop.xlane.xlu0 %100  ;;  %v268_v29 = vpop.xlane.xlu1 %267 }
  0xa6   :  { %v627_v30 = vsub.f32 %v260_v5, %v268_v29  ;;  %v660_v56 = vsub.f32 %v585_v4, %v101_v28 }
  0xa8   :  { %v290_v33 = vmul.f32 1.442695, %v627_v30  ;;  %v107_v61 = vmul.f32 1.442695, %v660_v56 }
  0xa9   :  { %v104_v31 = vpop.xlane.xlu0 %103  ;;  %v271_v32 = vpop.xlane.xlu1 %270 }
  0xaa   :  { %415 = vpow2.f32 %v290_v33  ;;  %v671_v62 = vsub.f32 %v591_v8, %v104_v31  ;;  %v683_v5 = vsub.f32 %v593_v9, %v271_v32 }
  0xac   :  { %v109_v4 = vmul.f32 1.442695, %v671_v62 }
  0xad   :  { %v274_v34 = vpop.xlane.xlu0 %273  ;;  %v277_v35 = vpop.xlane.xlu1 %276 }
  0xae   :  { %v630_v36 = vsub.f32 %v262_v16, %v274_v34 }
  0xb0   :  { %v294_v38 = vmul.f32 1.442695, %v630_v36 }
  0xb1   :  { %v280_v39 = vpop.xlane.xlu0 %279  ;;  %v283_v40 = vpop.xlane.xlu1 %282 }
  0xb2   :  { %v633_v41 = vsub.f32 %v264_v22, %v280_v39  ;;  %417 = vpow2.f32 %v294_v38  ;;  %v703_v15 = vsub.f32 %v616_v23, %v283_v40 }
  0xb4   :  { %v298_v44 = vmul.f32 1.442695, %v633_v41  ;;  %v416_v49 = vpop.eup %415 }
  0xb5   :  { %v55_v45 = vpop.permute.xlu1 %54  ;;  %v302_v54 = vsel %vm76_vm0, %v416_v49, 0.0 }
  0xb6   :  { %vm639_vm1 = vcmp.eq.s32.totalorder %v49_v42, %v55_v45  ;;  %419 = vpow2.f32 %v298_v44 }
  0xb7   :  { %v66_v47 = vsel %vm639_vm1, %v405_v43, 0.0  ;;  %421 = vpow2.f32 %v107_v61 }
  0xb8   :  { %v645_v48 = vsub.f32 %v39_v7, %v66_v47  ;;  %v667_v60 = vsub.f32 %v595_v11, %v66_v47  ;;  %423 = vpow2.f32 %v109_v4  ;;  %v693_v11 = vsub.f32 %v605_v17, %v277_v35 }
  0xb9   :  { %v52_v50 = vpop.permute.xlu0 %51  ;;  %v699_v13 = vsub.f32 %v609_v19, %v66_v47 }
  0xba   :  { %vm647_vm2 = vcmp.eq.s32.totalorder %v49_v42, %v52_v50  ;;  %v142_v52 = vsel %vm76_vm0, %v645_v48, -inf  ;;  %v148_v2 = vsel %vm76_vm0, %v667_v60, -inf  ;;  %v296_v14 = vmul.f32 1.442695, %v693_v11 }
  0xbb   :  { %143 = vmax.xlane.f32.xlu0 %v142_v52  ;;  %v65_v53 = vsel %vm647_vm2, %v405_v43, 0.0  ;;  %v154_v16 = vsel %vm76_vm0, %v699_v13, -inf }
  0xbc   :  { %v657_v55 = vsub.f32 %v583_v3, %v65_v53  ;;  %v664_v58 = vsub.f32 %v40_v10, %v65_v53  ;;  %v418_v59 = vpop.eup %417  ;;  %v406_v3 = vld [vmem:[%s812_s2] ss:$0 sm:$0xff]  ;;  %v687_v7 = vsub.f32 %v607_v18, %v65_v53  ;;  %v292_v10 = vmul.f32 1.442695, %v683_v5  ;;  %s529_s2 = smov [#allocation5]  }
  0xbd   :  { %v308_v63 = vsel %vm76_vm0, %v418_v59, 0.0  ;;  %v74_v8 = vsel %vm647_vm2, %v406_v3, 0.0  ;;  %v300_v18 = vmul.f32 1.442695, %v703_v15  ;;  %v75_v28 = vsel %vm639_vm1, %v406_v3, 0.0  ;;  %s396_s20 = sshll.u32 %s529_s2, 4  ;;  %s397_s20 = int_to_ptr.vmem [resolvable:$true] %s396_s20 }
  0xbe   :  { %v139_v57 = vsel %vm76_vm0, %v657_v55, -inf  ;;  %v145_v0 = vsel %vm76_vm0, %v664_v58, -inf  ;;  %v77_v12 = vsel %vm76_vm0, %v74_v8, 0.0  ;;  %v151_v9 = vsel %vm76_vm0, %v687_v7, -inf  ;;  %s499_s21 = scalar_lea.vmem %s397_s20, 16  ;;  %s503_s22 = scalar_lea.vmem %s397_s20, 32 }
  0xbf   :  { %303 = vadd.xlane.f32.xlu0 %v302_v54  ;;  %140 = vmax.xlane.f32.xlu1 %v139_v57  ;;  %425 = vpow2.f32 %v292_v10  ;;  %v80_v29 = vsel %vm76_vm0, %v75_v28, 0.0  ;;  %p500_p8 = scmp.ne.s32.totalorder %s397_s20, %s499_s21  ;;  %p504_p9 = scmp.lt.s32.totalorder %s397_s20, %s397_s20 }
  0xc0   :  { %v420_v1 = vpop.eup %419  ;;  %427 = vpow2.f32 %v296_v14  ;;  %p505_p10 = scmp.lt.s32.totalorder %s503_s22, %s499_s21 }
  0xc1   :  { %v314_v6 = vsel %vm76_vm0, %v420_v1, 0.0  ;;  %v707_v17 = vpop.eup %421  ;;  %429 = vpow2.f32 %v300_v18 }
  0xc2   :  { %v111_v19 = vsel %vm76_vm0, %v707_v17, 0.0  ;;  %v712_v20 = vpop.eup %423  ;;  %p506_p11 = por %p505_p10, %p504_p9 }
  0xc3   :  { %309 = vadd.xlane.f32.xlu0 %v308_v63  ;;  %146 = vmax.xlane.f32.xlu1 %v145_v0  ;;  %v114_v21 = vsel %vm76_vm0, %v712_v20, 0.0 }
  0xc4   :  { %p507_p12 = pnand %p506_p11, %p500_p8 }
  0xc7   :  { %315 = vadd.xlane.f32.xlu0 %v314_v6  ;;  %149 = vmax.xlane.f32.xlu1 %v148_v2 }
  0xc9   :  { %v426_v22 = vpop.eup %425 }
  0xca   :  { %v305_v23 = vsel %vm76_vm0, %v426_v22, 0.0  ;;  %v428_v24 = vpop.eup %427 }
  0xcb   :  { %78 = vadd.xlane.f32.xlu0 %v77_v12  ;;  %152 = vmax.xlane.f32.xlu1 %v151_v9  ;;  %v311_v25 = vsel %vm76_vm0, %v428_v24, 0.0  ;;  %v430_v26 = vpop.eup %429 }
  0xcc   :  { %v317_v27 = vsel %vm76_vm0, %v430_v26, 0.0 }
  0xcf   :  { %155 = vmax.xlane.f32.xlu1 %v154_v16 }
  0xd3   :  { %112 = vadd.xlane.f32.xlu1 %v111_v19 }
  0xd7   :  { %115 = vadd.xlane.f32.xlu1 %v114_v21 }
  0xdb   :  { %306 = vadd.xlane.f32.xlu1 %v305_v23 }
  0xdf   :  { %312 = vadd.xlane.f32.xlu1 %v311_v25 }
  0xe3   :  { %318 = vadd.xlane.f32.xlu1 %v317_v27 }
  0xe7   :  { %81 = vadd.xlane.f32.xlu1 %v80_v29 }
 0x148   :  { %v144_v31 = vpop.xlane.xlu0 %143 }
 0x149   :  { %v158_v32 = vsub.f32 %v645_v48, %v144_v31 }
 0x14b   :  { %v165_v33 = vmul.f32 1.442695, %v158_v32  ;;  %v210_v34 = vsel %vm639_vm1, %v158_v32, 0.0 }
 0x14c   :  { %v141_v35 = vpop.xlane.xlu1 %140  ;;  %v218_v37 = vsel %vm76_vm0, %v210_v34, 0.0  ;;  %v304_v52 = vpop.xlane.xlu0 %303 }
 0x14d   :  { %v157_v38 = vsub.f32 %v657_v55, %v141_v35  ;;  %219 = vadd.xlane.f32.xlu1 %v218_v37  ;;  %431 = vpow2.f32 %v165_v33 }
 0x14f   :  { %v163_v39 = vmul.f32 1.442695, %v157_v38  ;;  %v209_v40 = vsel %vm647_vm2, %v157_v38, 0.0 }
 0x150   :  { %v147_v42 = vpop.xlane.xlu1 %146  ;;  %v215_v43 = vsel %vm76_vm0, %v209_v40, 0.0  ;;  %v310_v2 = vpop.xlane.xlu0 %309 }
 0x151   :  { %433 = vpow2.f32 %v163_v39  ;;  %v159_v44 = vsub.f32 %v664_v58, %v147_v42  ;;  %216 = vadd.xlane.f32.xlu0 %v215_v43 }
 0x153   :  { %v167_v45 = vmul.f32 1.442695, %v159_v44  ;;  %v211_v47 = vsel %vm647_vm2, %v159_v44, 0.0 }
 0x154   :  { %v150_v48 = vpop.xlane.xlu1 %149  ;;  %v221_v49 = vsel %vm76_vm0, %v211_v47, 0.0  ;;  %v316_v12 = vpop.xlane.xlu0 %315 }
 0x155   :  { %435 = vpow2.f32 %v167_v45  ;;  %v160_v50 = vsub.f32 %v667_v60, %v150_v48  ;;  %222 = vadd.xlane.f32.xlu0 %v221_v49 }
 0x157   :  { %v169_v53 = vmul.f32 1.442695, %v160_v50  ;;  %v212_v54 = vsel %vm639_vm1, %v160_v50, 0.0  ;;  %v432_v58 = vpop.eup %431 }
 0x158   :  { %v153_v55 = vpop.xlane.xlu1 %152  ;;  %v224_v57 = vsel %vm76_vm0, %v212_v54, 0.0  ;;  %v178_v1 = vsel %vm76_vm0, %v432_v58, 0.0 }
 0x159   :  { %437 = vpow2.f32 %v169_v53  ;;  %v739_v59 = vsub.f32 %v687_v7, %v153_v55  ;;  %225 = vadd.xlane.f32.xlu1 %v224_v57 }
 0x15b   :  { %v434_v61 = vpop.eup %433  ;;  %v171_v63 = vmul.f32 1.442695, %v739_v59 }
 0x15c   :  { %v156_v0 = vpop.xlane.xlu1 %155  ;;  %v175_v60 = vsel %vm76_vm0, %v434_v61, 0.0 }
 0x15d   :  { %439 = vpow2.f32 %v171_v63  ;;  %v745_v3 = vsub.f32 %v699_v13, %v156_v0  ;;  %176 = vadd.xlane.f32.xlu0 %v175_v60  ;;  %179 = vadd.xlane.f32.xlu1 %v178_v1 }
 0x15e   :  { %441 = vlog2.f32 %v304_v52 }
 0x15f   :  { %v436_v4 = vpop.eup %435  ;;  %v173_v6 = vmul.f32 1.442695, %v745_v3  ;;  %443 = vlog2.f32 %v310_v2  ;;  %v214_v2 = vsel %vm639_vm1, %v745_v3, 0.0 }
 0x160   :  { %v748_v7 = vpop.xlane.xlu1 %112  ;;  %v181_v8 = vsel %vm76_vm0, %v436_v4, 0.0  ;;  %v79_v4 = vpop.xlane.xlu0 %78 }
 0x161   :  { %445 = vpow2.f32 %v173_v6  ;;  %182 = vadd.xlane.f32.xlu0 %v181_v8 }
 0x162   :  { %447 = vlog2.f32 %v748_v7 }
 0x163   :  { %v438_v10 = vpop.eup %437 }
 0x164   :  { %v752_v9 = vpop.xlane.xlu1 %115  ;;  %v184_v13 = vsel %vm76_vm0, %v438_v10, 0.0 }
 0x165   :  { %449 = vlog2.f32 %v752_v9  ;;  %185 = vadd.xlane.f32.xlu1 %v184_v13 }
 0x166   :  { %451 = vlog2.f32 %v316_v12 }
 0x167   :  { %v440_v14 = vpop.eup %439 }
 0x168   :  { %v442_v16 = vpop.eup %441  ;;  %v307_v18 = vpop.xlane.xlu1 %306  ;;  %v187_v19 = vsel %vm76_vm0, %v440_v14, 0.0 }
 0x169   :  { %453 = vlog2.f32 %v307_v18  ;;  %188 = vadd.xlane.f32.xlu0 %v187_v19  ;;  %v444_v21 = vpop.eup %443  ;;  %v321_v23 = vmul.f32 0.6931472, %v442_v16 }
 0x16a   :  { %v325_v29 = vmul.f32 0.6931472, %v444_v21 }
 0x16b   :  { %v446_v22 = vpop.eup %445  ;;  %v332_v32 = vsub.f32 %v627_v30, %v321_v23 }
 0x16c   :  { %v448_v24 = vpop.eup %447  ;;  %v313_v25 = vpop.xlane.xlu1 %312  ;;  %v190_v26 = vsel %vm76_vm0, %v446_v22, 0.0  ;;  %v334_v44 = vsub.f32 %v630_v36, %v325_v29 }
 0x16d   :  { %v118_v27 = vmul.f32 0.6931472, %v448_v24  ;;  %455 = vlog2.f32 %v313_v25  ;;  %191 = vadd.xlane.f32.xlu1 %v190_v26  ;;  %v338_v43 = vmul.f32 %v707_v17, %v332_v32 }
 0x16f   :  { %v450_v28 = vpop.eup %449  ;;  %v121_v31 = vsub.f32 %v660_v56, %v118_v27  ;;  %v344_v49 = vsel %vm76_vm0, %v338_v43, 0.0 }
 0x170   :  { %v452_v33 = vpop.eup %451  ;;  %v120_v34 = vmul.f32 0.6931472, %v450_v28  ;;  %v319_v35 = vpop.xlane.xlu1 %318 }
 0x171   :  { %457 = vlog2.f32 %v319_v35  ;;  %v123_v37 = vmul.f32 %v707_v17, %v121_v31  ;;  %v329_v40 = vmul.f32 0.6931472, %v452_v33 }
 0x172   :  { %v122_v38 = vsub.f32 %v671_v62, %v120_v34  ;;  %v340_v62 = vmul.f32 %v707_v17, %v334_v44 }
 0x173   :  { %v454_v39 = vpop.eup %453  ;;  %v125_v42 = vsel %vm76_vm0, %v123_v37, 0.0  ;;  %v336_v50 = vsub.f32 %v633_v41, %v329_v40 }
 0x174   :  { %v323_v45 = vmul.f32 0.6931472, %v454_v39  ;;  %126 = vadd.xlane.f32.xlu0 %v125_v42  ;;  %v124_v30 = vmul.f32 %v712_v20, %v122_v38  ;;  %v350_v57 = vsel %vm76_vm0, %v340_v62, 0.0  ;;  %v82_v6 = vpop.xlane.xlu1 %81 }
 0x175   :  { %v83_v18 = vadd.f32 %v82_v6, %v79_v4 }
 0x176   :  { %v128_v56 = vsel %vm76_vm0, %v124_v30, 0.0  ;;  %v333_v47 = vsub.f32 %v683_v5, %v323_v45  ;;  %v342_v5 = vmul.f32 %v707_v17, %v336_v50  ;;  %v234_v50 = vsub.f32 0.0, %v82_v6 }
 0x177   :  { %v456_v48 = vpop.eup %455  ;;  %129 = vadd.xlane.f32.xlu1 %v128_v56  ;;  %v84_v23 = vrot.slane %v83_v18, 4 }
 0x178   :  { %v327_v52 = vmul.f32 0.6931472, %v456_v48  ;;  %345 = vadd.xlane.f32.xlu0 %v344_v49  ;;  %v339_v36 = vmul.f32 %v712_v20, %v333_v47  ;;  %v356_v0 = vsel %vm76_vm0, %v342_v5, 0.0  ;;  %v233_v47 = vsub.f32 0.0, %v79_v4 }
 0x179   :  { %v85_v29 = vadd.f32 %v84_v23, %v83_v18 }
 0x17a   :  { %v347_v53 = vsel %vm76_vm0, %v339_v36, 0.0  ;;  %v335_v54 = vsub.f32 %v693_v11, %v327_v52  ;;  %v213_v11 = vsel %vm647_vm2, %v739_v59, 0.0 }
 0x17b   :  { %v458_v55 = vpop.eup %457  ;;  %348 = vadd.xlane.f32.xlu1 %v347_v53  ;;  %v227_v1 = vsel %vm76_vm0, %v213_v11, 0.0  ;;  %v86_v44 = vrot.slane %v85_v29, 2 }
 0x17c   :  { %v331_v58 = vmul.f32 0.6931472, %v458_v55  ;;  %351 = vadd.xlane.f32.xlu0 %v350_v57  ;;  %v341_v61 = vmul.f32 %v712_v20, %v335_v54 }
 0x17e   :  { %v353_v41 = vsel %vm76_vm0, %v341_v61, 0.0  ;;  %v337_v63 = vsub.f32 %v703_v15, %v331_v58  ;;  %v230_v15 = vsel %vm76_vm0, %v214_v2, 0.0 }
 0x17f   :  { %354 = vadd.xlane.f32.xlu1 %v353_v41  ;;  %v87_v41 = vadd.f32 %v86_v44, %v85_v29 }
 0x180   :  { %357 = vadd.xlane.f32.xlu0 %v356_v0  ;;  %v343_v60 = vmul.f32 %v712_v20, %v337_v63 }
 0x182   :  { %v359_v17 = vsel %vm76_vm0, %v343_v60, 0.0 }
 0x183   :  { %360 = vadd.xlane.f32.xlu1 %v359_v17 }
 0x184   :  { %228 = vadd.xlane.f32.xlu0 %v227_v1 }
 0x187   :  { %231 = vadd.xlane.f32.xlu1 %v230_v15 }
 0x1da   :  { %v792_v51 = vpop.xlane.xlu1 %219 }
 0x1de   :  { %v790_v8 = vpop.xlane.xlu0 %216 }
 0x1e2   :  { %v223_v20 = vpop.xlane.xlu0 %222 }
 0x1e6   :  { %v226_v59 = vpop.xlane.xlu1 %225 }
 0x1ea   :  { %v177_v10 = vpop.xlane.xlu0 %176  ;;  %v180_v12 = vpop.xlane.xlu1 %179 }
 0x1ee   :  { %v183_v13 = vpop.xlane.xlu0 %182 }
 0x1ef   :  { %459 = vlog2.f32 %v183_v13 }
 0x1f2   :  { %v186_v14 = vpop.xlane.xlu1 %185 }
 0x1f3   :  { %461 = vlog2.f32 %v186_v14 }
 0x1f4   :  { %463 = vlog2.f32 %v177_v10  ;;  %v88_v10 = vrot.slane %v87_v41, 1 }
 0x1f5   :  { %465 = vlog2.f32 %v180_v12 }
 0x1f6   :  { %v189_v46 = vpop.xlane.xlu0 %188  ;;  %467 = vrcp.f32 %v748_v7 }
 0x1f7   :  { %469 = vlog2.f32 %v189_v46 }
 0x1f8   :  { %471 = vrcp.f32 %v752_v9 }
 0x1f9   :  { %v460_v22 = vpop.eup %459 }
 0x1fa   :  { %v192_v3 = vpop.xlane.xlu1 %191  ;;  %v198_v31 = vmul.f32 0.6931472, %v460_v22 }
 0x1fb   :  { %473 = vlog2.f32 %v192_v3 }
 0x1fc   :  { %v237_v45 = vsub.f32 %v223_v20, %v198_v31 }
 0x1fd   :  { %v462_v24 = vpop.eup %461 }
 0x1fe   :  { %v464_v25 = vpop.eup %463  ;;  %v200_v32 = vmul.f32 0.6931472, %v462_v24  ;;  %v243_v63 = vmul.f32 %v237_v45, %v233_v47 }
 0x1ff   :  { %v466_v27 = vpop.eup %465  ;;  %v194_v7 = vmul.f32 0.6931472, %v464_v25 }
 0x200   :  { %v468_v34 = vpop.eup %467  ;;  %v196_v35 = vmul.f32 0.6931472, %v466_v27  ;;  %v238_v30 = vsub.f32 %v226_v59, %v200_v32 }
 0x201   :  { %v127_v16 = vpop.xlane.xlu0 %126  ;;  %v470_v38 = vpop.eup %469  ;;  %v235_v52 = vsub.f32 %v790_v8, %v194_v7 }
 0x202   :  { %v472_v43 = vpop.eup %471  ;;  %v236_v36 = vsub.f32 %v792_v51, %v196_v35  ;;  %v202_v53 = vmul.f32 0.6931472, %v470_v38  ;;  %v244_v0 = vmul.f32 %v238_v30, %v234_v50 }
 0x203   :  { %v241_v15 = vmul.f32 %v235_v52, %v233_v47 }
 0x204   :  { %v130_v19 = vpop.xlane.xlu1 %129  ;;  %v242_v4 = vmul.f32 %v236_v36, %v234_v50 }
 0x205   :  { %v346_v21 = vpop.xlane.xlu0 %345  ;;  %v474_v62 = vpop.eup %473  ;;  %v247_v12 = vadd.f32 %v243_v63, %v241_v15 }
 0x206   :  { %v362_v9 = vsub.f32 %v127_v16, %v346_v21  ;;  %v204_v2 = vmul.f32 0.6931472, %v474_v62  ;;  %v249_v14 = vadd.f32 %v244_v0, %v242_v4 }
 0x208   :  { %v349_v26 = vpop.xlane.xlu1 %348  ;;  %v368_v55 = vmul.f32 %v468_v34, %v362_v9 }
 0x209   :  { %v352_v28 = vpop.xlane.xlu0 %351  ;;  %v363_v39 = vsub.f32 %v130_v19, %v349_v26 }
 0x20a   :  { %v364_v33 = vsub.f32 %v127_v16, %v352_v28 }
 0x20b   :  { %v369_v57 = vmul.f32 %v472_v43, %v363_v39 }
 0x20c   :  { %v355_v37 = vpop.xlane.xlu1 %354  ;;  %v370_v48 = vmul.f32 %v468_v34, %v364_v33 }
 0x20d   :  { %v358_v40 = vpop.xlane.xlu0 %357  ;;  %v365_v42 = vsub.f32 %v130_v19, %v355_v37 }
 0x20e   :  { %v366_v56 = vsub.f32 %v127_v16, %v358_v40  ;;  %v374_v60 = vadd.f32 %v370_v48, %v368_v55 }
 0x20f   :  { %v371_v49 = vmul.f32 %v472_v43, %v365_v42 }
 0x210   :  { %v361_v54 = vpop.xlane.xlu1 %360  ;;  %v372_v5 = vmul.f32 %v468_v34, %v366_v56 }
 0x211   :  { %v229_v58 = vpop.xlane.xlu0 %228  ;;  %v367_v61 = vsub.f32 %v130_v19, %v361_v54  ;;  %v376_v17 = vadd.f32 %v371_v49, %v369_v57  ;;  %v89_v19 = vadd.f32 %v88_v10, %v87_v41 }
 0x212   :  { %v239_v11 = vsub.f32 %v229_v58, %v202_v53  ;;  %v375_v8 = vadd.f32 %v374_v60, %v372_v5 }
 0x213   :  { %v373_v1 = vmul.f32 %v472_v43, %v367_v61  ;;  %475 = vrcp.f32 %v89_v19 }
 0x214   :  { %v232_v6 = vpop.xlane.xlu1 %231  ;;  %v245_v51 = vmul.f32 %v239_v11, %v233_v47 }
 0x215   :  { %v377_v20 = vadd.f32 %v376_v17, %v373_v1  ;;  %v240_v59 = vsub.f32 %v232_v6, %v204_v2 }
 0x216   :  { %v248_v3 = vadd.f32 %v247_v12, %v245_v51 }
 0x217   :  { %v378_v13 = vadd.f32 %v377_v20, %v375_v8  ;;  %v246_v46 = vmul.f32 %v240_v59, %v234_v50 }
 0x219   :  { %v379_v16 = vrot.slane %v378_v13, 4  ;;  %v250_v18 = vadd.f32 %v249_v14, %v246_v46 }
 0x21b   :  { %v380_v21 = vadd.f32 %v379_v16, %v378_v13  ;;  %v251_v22 = vadd.f32 %v250_v18, %v248_v3 }
 0x21d   :  { %v381_v23 = vrot.slane %v380_v21, 2  ;;  %v252_v24 = vrot.slane %v251_v22, 4  ;;  %v476_v7 = vpop.eup %475 }
 0x21f   :  { %v382_v25 = vadd.f32 %v381_v23, %v380_v21  ;;  %v253_v26 = vadd.f32 %v252_v24, %v251_v22 }
 0x221   :  { %v254_v27 = vrot.slane %v253_v26, 2  ;;  %v383_v28 = vrot.slane %v382_v25, 1 }
 0x223   :  { %v255_v29 = vadd.f32 %v254_v27, %v253_v26  ;;  %v384_v31 = vadd.f32 %v383_v28, %v382_v25 }
 0x225   :  { %v256_v32 = vrot.slane %v255_v29, 1  ;;  %v385_v33 = vmul.f32 0.0625, %v384_v31 }
 0x227   :  { %v257_v34 = vadd.f32 %v256_v32, %v255_v29  ;;  %v386_v37 = vmul.f32 -0.16395247, %v385_v33 }
 0x229   :  { %v259_v35 = vmul.f32 %v476_v7, %v257_v34 }
 0x22b   :  { %v387_v38 = vadd.f32 %v386_v37, %v259_v35 }
 0x22d   :  { %389 = vst.msk [vmem:[#allocation5] sm:$0x1] %vm388_vm3, %v387_v38 }
 0x22e   :  { %510 = shalt.err (!%p507_p12)
}
 0x22f   :  { %s511_s25 = scalar_lea.hbm %s816_s6, 16 }
 0x230   :  { %p512_p13 = scmp.ne.s32.totalorder %s816_s6, %s511_s25  ;;  %p515_p0 = scmp.lt.u32.totalorder %s511_s25, %s816_s6 }
 0x232   :  { %p517_p1 = pnand %p515_p0, %p512_p13 }
 0x234   :  { %520 = shalt.err (!%p517_p1)
}
 0x235   :  { %399 = dma.vmem_to_hbm [thread:$0]  %s397_s20, 16, %s816_s6, [#allocation4]  }
 0x236   :  { %523 = dma.done.wait [#allocation4], 16  }
 0x237   :  { %524 = vsyncadd [#allocation4], 4294967280 }
 0x238   :  { %403 = vsyncpa [#allocation3], 1 }
 0x239   :  { %404 = vsyncpa [#allocation4], 1 }

</bundles_post_ra>
